<compile_context>
chip_gen: v7x
topology: tpu7x:2x2x1
jax: 0.10.0
libtpu: 0.0.40
codegen_flags: <defaults>
</compile_context>

<pallas_src>
import functools

import jax
import jax.numpy as jnp
from jax.experimental import pallas as pl
from jax.experimental.pallas import tpu as pltpu

IN_FEATURES = 135
HIDDEN = 256
OUT_FEATURES = 2
DEFAULT_TM = 2048      # batch tile (rows); ~5 MiB VMEM/step, safe on v5e/v6e/v7x


def _round_up(x, m):
    return ((x + m - 1) // m) * m


def _mlp_kernel(x_ref, w1_ref, b1_ref, w2_ref, b2_ref, w3_ref, b3_ref, o_ref):
    # Cast activations to bf16 in VMEM (VPU op, hidden under the DMA); MXU
    # accumulates in f32 via preferred_element_type.
    x_bf = x_ref[...].astype(jnp.bfloat16)

    # Layer 1: (TM, 135)bf16 @ (135, 256)bf16 -> f32, + bias, ReLU
    h1 = jnp.dot(x_bf, w1_ref[...], preferred_element_type=jnp.float32)
    h1 = jnp.maximum(h1 + b1_ref[...], 0.0)
    # Dropout(p=0) is identity in the forward pass -> no-op.

    # Layer 2: (TM, 256)bf16 @ (256, 256)bf16 -> f32, + bias, ReLU
    h2 = jnp.dot(h1.astype(jnp.bfloat16), w2_ref[...],
                 preferred_element_type=jnp.float32)
    h2 = jnp.maximum(h2 + b2_ref[...], 0.0)

    # Layer 3: (TM, 256)bf16 @ (256, 2)bf16 -> f32, + bias.
    out = jnp.dot(h2.astype(jnp.bfloat16), w3_ref[...],
                  preferred_element_type=jnp.float32) + b3_ref[...]

    o_ref[...] = out.astype(o_ref.dtype)


@functools.partial(jax.jit, static_argnames=("tm",))
def feedforward_nn(x, params, *, tm=DEFAULT_TM):
    """x: (batch, 135) float32. params: dict of (in,out) weights, (1,out) biases."""
    batch = x.shape[0]

    # Adapt the tile for small batches; keep it a multiple of 8 (sublane).
    tm_eff = min(tm, _round_up(batch, 8))
    num_tiles = pl.cdiv(batch, tm_eff)
    padded_batch = num_tiles * tm_eff
    if padded_batch != batch:
        x = jnp.pad(x, ((0, padded_batch - batch), (0, 0)))

    # Weights are tiny: cast once in the wrapper (stay resident in VMEM).
    w1 = params["w1"].astype(jnp.bfloat16)
    w2 = params["w2"].astype(jnp.bfloat16)
    w3 = params["w3"].astype(jnp.bfloat16)
    b1 = params["b1"].astype(jnp.float32)
    b2 = params["b2"].astype(jnp.float32)
    b3 = params["b3"].astype(jnp.float32)

    out = pl.pallas_call(
        _mlp_kernel,
        out_shape=jax.ShapeDtypeStruct((padded_batch, OUT_FEATURES), jnp.float32),
        grid=(num_tiles,),
        in_specs=[
            # x: tiled over batch, full feature axis of 135 (== full array dim).
            pl.BlockSpec((tm_eff, IN_FEATURES), lambda i: (i, 0)),
            # weights / biases: full blocks, same index every step -> VMEM resident.
            pl.BlockSpec((IN_FEATURES, HIDDEN), lambda i: (0, 0)),
            pl.BlockSpec((1, HIDDEN), lambda i: (0, 0)),
            pl.BlockSpec((HIDDEN, HIDDEN), lambda i: (0, 0)),
            pl.BlockSpec((1, HIDDEN), lambda i: (0, 0)),
            pl.BlockSpec((HIDDEN, OUT_FEATURES), lambda i: (0, 0)),
            pl.BlockSpec((1, OUT_FEATURES), lambda i: (0, 0)),
        ],
        out_specs=pl.BlockSpec((tm_eff, OUT_FEATURES), lambda i: (i, 0)),
        compiler_params=pltpu.CompilerParams(
            dimension_semantics=("parallel",),   # megacore split on v7x
        ),
    )(x, w1, b1, w2, b2, w3, b3)

    return out[:batch]


def init_params(key):
    """Deterministic init mimicking PyTorch nn.Linear (uniform +-1/sqrt(fan_in)).

    Weights stored as (in_features, out_features), biases as (1, out_features).
    """
    def linear(k, fan_in, fan_out):
        kw, kb = jax.random.split(k)
        bound = 1.0 / jnp.sqrt(fan_in)
        w = jax.random.uniform(kw, (fan_in, fan_out), jnp.float32, -bound, bound)
        b = jax.random.uniform(kb, (1, fan_out), jnp.float32, -bound, bound)
        return w, b

    k1, k2, k3 = jax.random.split(key, 3)
    w1, b1 = linear(k1, IN_FEATURES, HIDDEN)
    w2, b2 = linear(k2, HIDDEN, HIDDEN)
    w3, b3 = linear(k3, HIDDEN, OUT_FEATURES)
    return {"w1": w1, "b1": b1, "w2": w2, "b2": b2, "w3": w3, "b3": b3}


if __name__ == "__main__":
    key = jax.random.PRNGKey(0)
    kx, kp = jax.random.split(key)

    batch = 8
    x = jax.random.normal(kx, (batch, IN_FEATURES), jnp.float32)
    params = init_params(kp)

    out = feedforward_nn(x, params)
    out = jax.block_until_ready(out)
    assert out.shape == (batch, OUT_FEATURES)

    # Reference check against plain JAX with the same bf16 operand rounding
    # (f32 accumulation), matching the kernel's numerics.
    bf = lambda a: a.astype(jnp.bfloat16).astype(jnp.float32)
    h1 = jnp.maximum(bf(x) @ bf(params["w1"]) + params["b1"], 0.0)
    h2 = jnp.maximum(bf(h1) @ bf(params["w2"]) + params["b2"], 0.0)
    ref = bf(h2) @ bf(params["w3"]) + params["b3"]
    assert jnp.allclose(out, ref, atol=1e-3, rtol=1e-3), (
        f"max abs diff {jnp.max(jnp.abs(out - ref))}")

    print("KERNEL_OK")
</pallas_src>

<mosaic_0001>
module attributes {stable_mosaic.version = 11 : i64} {
  func.func @_mlp_kernel(%arg0: i32, %arg1: memref<8x135xf32, #tpu.memory_space<vmem>>, %arg2: memref<135x256xbf16, #tpu.memory_space<vmem>>, %arg3: memref<1x256xf32, #tpu.memory_space<vmem>>, %arg4: memref<256x256xbf16, #tpu.memory_space<vmem>>, %arg5: memref<1x256xf32, #tpu.memory_space<vmem>>, %arg6: memref<256x2xbf16, #tpu.memory_space<vmem>>, %arg7: memref<1x2xf32, #tpu.memory_space<vmem>>, %arg8: memref<8x2xf32, #tpu.memory_space<vmem>>) attributes {dimension_semantics = [#tpu.dimension_semantics<parallel>], iteration_bounds = array<i64: 1>, scalar_prefetch = 0 : i64, scratch_operands = 0 : i64, tpu.core_type = #tpu.core_type<tc>, window_params = [{transform_indices = @transform_0, window_bounds = array<i64: 8, 135>}, {pipeline_mode = #tpu.pipeline_mode<synchronous>, transform_indices = @transform_1, window_bounds = array<i64: 135, 256>}, {pipeline_mode = #tpu.pipeline_mode<synchronous>, transform_indices = @transform_2, window_bounds = array<i64: 1, 256>}, {pipeline_mode = #tpu.pipeline_mode<synchronous>, transform_indices = @transform_3, window_bounds = array<i64: 256, 256>}, {pipeline_mode = #tpu.pipeline_mode<synchronous>, transform_indices = @transform_4, window_bounds = array<i64: 1, 256>}, {pipeline_mode = #tpu.pipeline_mode<synchronous>, transform_indices = @transform_5, window_bounds = array<i64: 256, 2>}, {pipeline_mode = #tpu.pipeline_mode<synchronous>, transform_indices = @transform_6, window_bounds = array<i64: 1, 2>}, {transform_indices = @transform_7, window_bounds = array<i64: 8, 2>}]} {
    %c0 = arith.constant 0 : index
    %c0_0 = arith.constant 0 : index
    %0 = vector.load %arg1[%c0, %c0_0] : memref<8x135xf32, #tpu.memory_space<vmem>>, vector<8x135xf32>
    %1 = arith.truncf %0 : vector<8x135xf32> to vector<8x135xbf16>
    %c0_1 = arith.constant 0 : index
    %c0_2 = arith.constant 0 : index
    %2 = vector.load %arg2[%c0_1, %c0_2] : memref<135x256xbf16, #tpu.memory_space<vmem>>, vector<135x256xbf16>
    %cst = arith.constant dense<0.000000e+00> : vector<8x256xf32>
    %3 = tpu.matmul %1, %2, %cst {dimension_numbers = #tpu.dot_dimension_numbers<[1], [0], [0], [1], [0, 0, 1, 1], [], []>} : vector<8x135xbf16>, vector<135x256xbf16>, vector<8x256xf32> -> vector<8x256xf32>
    %c0_3 = arith.constant 0 : index
    %c0_4 = arith.constant 0 : index
    %4 = vector.load %arg3[%c0_3, %c0_4] : memref<1x256xf32, #tpu.memory_space<vmem>>, vector<1x256xf32>
    %5 = vector.broadcast %4 : vector<1x256xf32> to vector<8x256xf32>
    %6 = arith.addf %3, %5 : vector<8x256xf32>
    %cst_5 = arith.constant 0.000000e+00 : f32
    %7 = vector.broadcast %cst_5 : f32 to vector<8x256xf32>
    %8 = arith.maximumf %6, %7 : vector<8x256xf32>
    %9 = arith.truncf %8 : vector<8x256xf32> to vector<8x256xbf16>
    %c0_6 = arith.constant 0 : index
    %c0_7 = arith.constant 0 : index
    %10 = vector.load %arg4[%c0_6, %c0_7] : memref<256x256xbf16, #tpu.memory_space<vmem>>, vector<256x256xbf16>
    %cst_8 = arith.constant dense<0.000000e+00> : vector<8x256xf32>
    %11 = tpu.matmul %9, %10, %cst_8 {dimension_numbers = #tpu.dot_dimension_numbers<[1], [0], [0], [1], [0, 0, 1, 1], [], []>} : vector<8x256xbf16>, vector<256x256xbf16>, vector<8x256xf32> -> vector<8x256xf32>
    %c0_9 = arith.constant 0 : index
    %c0_10 = arith.constant 0 : index
    %12 = vector.load %arg5[%c0_9, %c0_10] : memref<1x256xf32, #tpu.memory_space<vmem>>, vector<1x256xf32>
    %13 = vector.broadcast %12 : vector<1x256xf32> to vector<8x256xf32>
    %14 = arith.addf %11, %13 : vector<8x256xf32>
    %cst_11 = arith.constant 0.000000e+00 : f32
    %15 = vector.broadcast %cst_11 : f32 to vector<8x256xf32>
    %16 = arith.maximumf %14, %15 : vector<8x256xf32>
    %17 = arith.truncf %16 : vector<8x256xf32> to vector<8x256xbf16>
    %c0_12 = arith.constant 0 : index
    %c0_13 = arith.constant 0 : index
    %18 = vector.load %arg6[%c0_12, %c0_13] : memref<256x2xbf16, #tpu.memory_space<vmem>>, vector<256x2xbf16>
    %cst_14 = arith.constant dense<0.000000e+00> : vector<8x2xf32>
    %19 = tpu.matmul %17, %18, %cst_14 {dimension_numbers = #tpu.dot_dimension_numbers<[1], [0], [0], [1], [0, 0, 1, 1], [], []>} : vector<8x256xbf16>, vector<256x2xbf16>, vector<8x2xf32> -> vector<8x2xf32>
    %c0_15 = arith.constant 0 : index
    %c0_16 = arith.constant 0 : index
    %20 = vector.load %arg7[%c0_15, %c0_16] : memref<1x2xf32, #tpu.memory_space<vmem>>, vector<1x2xf32>
    %21 = vector.broadcast %20 : vector<1x2xf32> to vector<8x2xf32>
    %22 = arith.addf %19, %21 : vector<8x2xf32>
    %c0_17 = arith.constant 0 : index
    %c0_18 = arith.constant 0 : index
    %23 = vector.load %arg8[%c0_17, %c0_18] : memref<8x2xf32, #tpu.memory_space<vmem>>, vector<8x2xf32>
    tpu.vector_store %arg8[%c0_17, %c0_18], %22 {strides = array<i32>} : memref<8x2xf32, #tpu.memory_space<vmem>>, vector<8x2xf32>,
    return
  }
  func.func @transform_0(%arg0: i32) -> (i32, i32) {
    %c0_i32 = arith.constant 0 : i32
    %c0_i32_0 = arith.constant 0 : i32
    return %arg0, %c0_i32 : i32, i32
  }
  func.func @transform_1(%arg0: i32) -> (i32, i32) {
    %c0_i32 = arith.constant 0 : i32
    %c0_i32_0 = arith.constant 0 : i32
    %c0_i32_1 = arith.constant 0 : i32
    return %c0_i32, %c0_i32_0 : i32, i32
  }
  func.func @transform_2(%arg0: i32) -> (i32, i32) {
    %c0_i32 = arith.constant 0 : i32
    %c0_i32_0 = arith.constant 0 : i32
    %c0_i32_1 = arith.constant 0 : i32
    return %c0_i32, %c0_i32_0 : i32, i32
  }
  func.func @transform_3(%arg0: i32) -> (i32, i32) {
    %c0_i32 = arith.constant 0 : i32
    %c0_i32_0 = arith.constant 0 : i32
    %c0_i32_1 = arith.constant 0 : i32
    return %c0_i32, %c0_i32_0 : i32, i32
  }
  func.func @transform_4(%arg0: i32) -> (i32, i32) {
    %c0_i32 = arith.constant 0 : i32
    %c0_i32_0 = arith.constant 0 : i32
    %c0_i32_1 = arith.constant 0 : i32
    return %c0_i32, %c0_i32_0 : i32, i32
  }
  func.func @transform_5(%arg0: i32) -> (i32, i32) {
    %c0_i32 = arith.constant 0 : i32
    %c0_i32_0 = arith.constant 0 : i32
    %c0_i32_1 = arith.constant 0 : i32
    return %c0_i32, %c0_i32_0 : i32, i32
  }
  func.func @transform_6(%arg0: i32) -> (i32, i32) {
    %c0_i32 = arith.constant 0 : i32
    %c0_i32_0 = arith.constant 0 : i32
    %c0_i32_1 = arith.constant 0 : i32
    return %c0_i32, %c0_i32_0 : i32, i32
  }
  func.func @transform_7(%arg0: i32) -> (i32, i32) {
    %c0_i32 = arith.constant 0 : i32
    %c0_i32_0 = arith.constant 0 : i32
    return %arg0, %c0_i32 : i32, i32
  }
}

</mosaic_0001>

<bundles_post_ra>
// kernel: feedforward_nn.1
= control target key start
LH: loop header
LB: loop body
LE: loop exit
PB: predicated region body
PF: predicated region fallthrough
CT: control target
= control target key end

     0   :  { %vm145_vm0 = vcmask 56320   ;;  %vm149_vm1 = vcmask 1042432   ;;  %vm150_vm2 = vcmask 1043456   ;;  %v815_v23 = vmov 65535   ;;  %s1069_s1 = inlined_call_operand.vmem [shape: bf16[135,256], index: 1, kind: input, shape index: {}]   ;;  %s1070_s0 = inlined_call_operand.vmem [shape: f32[8,135], index: 0, kind: input, shape index: {}]   ;;  %s1071_s3 = inlined_call_operand.vmem [shape: bf16[256,256], index: 3, kind: input, shape index: {}]   ;;  %s1072_s5 = inlined_call_operand.vmem [shape: bf16[256,2], index: 5, kind: input, shape index: {}]   ;;  %s1073_s2 = inlined_call_operand.vmem [shape: f32[1,256], index: 2, kind: input, shape index: {}]   ;;  %s1074_s4 = inlined_call_operand.vmem [shape: f32[1,256], index: 4, kind: input, shape index: {}]   ;;  %s1075_s6 = inlined_call_operand.vmem [shape: f32[1,2], index: 6, kind: input, shape index: {}]   ;;  %s1076_s7 = inlined_call_operand.vmem [shape: f32[8,2], index: 7, kind: output, shape index: {}]  }
   0x1   :  { %v725_v0 = vld [vmem:[%s1069_s1 + $0x4] ss:$8 sps:$4 sm:$0xff]   ;;  %v727_v1 = vld [vmem:[%s1069_s1] ss:$8 sps:$4 sm:$0xff]   ;;  %v728_v2 = vld [vmem:[%s1069_s1 + $0x14] ss:$8 sps:$4 sm:$0xff]  }
   0x2   :  { %159 = vmatprep.subr.bf16.mxu0 %v725_v0  ;;  %v730_v3 = vld [vmem:[%s1069_s1 + $0x10] ss:$8 sps:$4 sm:$0xff]   ;;  %v731_v4 = vld [vmem:[%s1069_s1 + $0x24] ss:$8 sps:$4 sm:$0xff]   ;;  %v733_v5 = vld [vmem:[%s1069_s1 + $0x20] ss:$8 sps:$4 sm:$0xff]  }
   0x3   :  { %160 = vmatpush1.bf16.msra.mxu0 %v727_v1  ;;  %v734_v6 = vld [vmem:[%s1069_s1 + $0x34] ss:$8 sps:$4 sm:$0xff]   ;;  %v736_v7 = vld [vmem:[%s1069_s1 + $0x30] ss:$8 sps:$4 sm:$0xff]   ;;  %v737_v8 = vld [vmem:[%s1069_s1 + $0x44] ss:$8 sps:$4 sm:$0xff]  }
   0x4   :  { %161 = vmatprep.subr.bf16.mxu0 %v728_v2  ;;  %v28_v9 = vld [vmem:[%s1070_s0 + $0x8] sm:$0xff]  ;;  %v754_v13 = vld [vmem:[%s1071_s3 + $0x14] ss:$8 sps:$4 sm:$0xff]   ;;  %v756_v15 = vld [vmem:[%s1071_s3 + $0x10] ss:$8 sps:$4 sm:$0xff]   ;;  %v151_v24 = vsel %vm149_vm1, 4294967295, %v815_v23 }
   0x5   :  { %v30_v10 = vpack.c.bf16 %v28_v9, %v28_v9  ;;  %v751_v11 = vld [vmem:[%s1071_s3 + $0x4] ss:$8 sps:$4 sm:$0xff]   ;;  %v753_v12 = vld [vmem:[%s1071_s3] ss:$8 sps:$4 sm:$0xff]   ;;  %v740_v16 = vld [vmem:[%s1069_s1 + $0x54] ss:$8 sps:$4 sm:$0xff]  }
   0x6   :  { %408 = vmatprep.subr.bf16.mxu1 %v751_v11  ;;  %v739_v14 = vld [vmem:[%s1069_s1 + $0x40] ss:$8 sps:$4 sm:$0xff]   ;;  %v757_v17 = vld [vmem:[%s1071_s3 + $0x24] ss:$8 sps:$4 sm:$0xff]   ;;  %v742_v18 = vld [vmem:[%s1069_s1 + $0x50] ss:$8 sps:$4 sm:$0xff]  }
   0x7   :  { %162 = vmatpush1.bf16.msra.mxu0 %v730_v3  ;;  %652 = vmatprep.mubr.msk.bf16.mxu0 %vm145_vm0, %v30_v10  ;;  %v759_v19 = vld [vmem:[%s1071_s3 + $0x20] ss:$8 sps:$4 sm:$0xff]   ;;  %v743_v20 = vld [vmem:[%s1069_s1 + $0x64] ss:$8 sps:$4 sm:$0xff]   ;;  %v760_v21 = vld [vmem:[%s1071_s3 + $0x34] ss:$8 sps:$4 sm:$0xff]  }
   0x8   :  { %163 = vmatprep.subr.bf16.mxu0 %v731_v4  ;;  %409 = vmatpush1.bf16.msra.mxu1 %v753_v12  ;;  %v47_v22 = vld [vmem:[%s1069_s1 + $0x80] sm:$0xff]  ;;  %v762_v26 = vld [vmem:[%s1071_s3 + $0x30] ss:$8 sps:$4 sm:$0xff]   ;;  %v746_v27 = vld [vmem:[%s1069_s1 + $0x74] ss:$8 sps:$4 sm:$0xff]   ;;  %v152_v30 = vsel %vm150_vm2, %v151_v24, 0 }
   0x9   :  { %410 = vmatprep.subr.bf16.mxu1 %v754_v13  ;;  %v745_v25 = vld [vmem:[%s1069_s1 + $0x60] ss:$8 sps:$4 sm:$0xff]   ;;  %v651_v28 = vcombine.high %v47_v22, %v47_v22  ;;  %v763_v29 = vld [vmem:[%s1071_s3 + $0x44] ss:$8 sps:$4 sm:$0xff]   ;;  %v748_v31 = vld [vmem:[%s1069_s1 + $0x70] ss:$8 sps:$4 sm:$0xff]   ;;  %v650_v32 = vcombine.low %v47_v22, %v47_v22 }
   0xa   :  { %v765_v33 = vld [vmem:[%s1071_s3 + $0x40] ss:$8 sps:$4 sm:$0xff]   ;;  %v766_v35 = vld [vmem:[%s1071_s3 + $0x54] ss:$8 sps:$4 sm:$0xff]   ;;  %v768_v37 = vld [vmem:[%s1071_s3 + $0x50] ss:$8 sps:$4 sm:$0xff]  }
   0xb   :  { %164 = vmatpush1.bf16.msra.mxu0 %v733_v5  ;;  %v157_v34 = vand.u32 %v651_v28, %v152_v30  ;;  %v27_v36 = vld [vmem:[%s1070_s0] sm:$0xff]  ;;  %v154_v38 = vand.u32 %v650_v32, %v152_v30  ;;  %v772_v42 = vld [vmem:[%s1071_s3 + $0x74] ss:$8 sps:$4 sm:$0xff]   ;;  %v774_v43 = vld [vmem:[%s1071_s3 + $0x70] ss:$8 sps:$4 sm:$0xff]   ;;  %vm628_vm3 = vcmask 15360  }
   0xc   :  { %165 = vmatprep.subr.bf16.mxu0 %v734_v6  ;;  %411 = vmatpush1.bf16.msra.mxu1 %v756_v15  ;;  %v769_v39 = vld [vmem:[%s1071_s3 + $0x64] ss:$8 sps:$4 sm:$0xff]   ;;  %v29_v40 = vpack.c.bf16 %v27_v36, %v27_v36  ;;  %v771_v41 = vld [vmem:[%s1071_s3 + $0x60] ss:$8 sps:$4 sm:$0xff]   ;;  %v778_v46 = vld [vmem:[%s1071_s3 + $0x94] ss:$8 sps:$4 sm:$0xff]  }
   0xd   :  { %412 = vmatprep.subr.bf16.mxu1 %v757_v17  ;;  %v775_v44 = vld [vmem:[%s1071_s3 + $0x84] ss:$8 sps:$4 sm:$0xff]   ;;  %v777_v45 = vld [vmem:[%s1071_s3 + $0x80] ss:$8 sps:$4 sm:$0xff]   ;;  %v780_v47 = vld [vmem:[%s1071_s3 + $0x90] ss:$8 sps:$4 sm:$0xff]  }
   0xe   :  { %v781_v48 = vld [vmem:[%s1071_s3 + $0xa4] ss:$8 sps:$4 sm:$0xff]   ;;  %v783_v49 = vld [vmem:[%s1071_s3 + $0xa0] ss:$8 sps:$4 sm:$0xff]   ;;  %v784_v50 = vld [vmem:[%s1071_s3 + $0xb4] ss:$8 sps:$4 sm:$0xff]  }
   0xf   :  { %166 = vmatpush1.bf16.msra.mxu0 %v736_v7  ;;  %v786_v51 = vld [vmem:[%s1071_s3 + $0xb0] ss:$8 sps:$4 sm:$0xff]   ;;  %v787_v52 = vld [vmem:[%s1071_s3 + $0xc4] ss:$8 sps:$4 sm:$0xff]   ;;  %v789_v53 = vld [vmem:[%s1071_s3 + $0xc0] ss:$8 sps:$4 sm:$0xff]  }
  0x10   :  { %167 = vmatprep.subr.bf16.mxu0 %v737_v8  ;;  %413 = vmatpush1.bf16.msra.mxu1 %v759_v19  ;;  %v790_v54 = vld [vmem:[%s1071_s3 + $0xd4] ss:$8 sps:$4 sm:$0xff]   ;;  %v792_v55 = vld [vmem:[%s1071_s3 + $0xd0] ss:$8 sps:$4 sm:$0xff]   ;;  %v793_v56 = vld [vmem:[%s1071_s3 + $0xe4] ss:$8 sps:$4 sm:$0xff]   ;;  %v50_v8 = vlaneseq }
  0x11   :  { %414 = vmatprep.subr.bf16.mxu1 %v760_v21  ;;  %v795_v57 = vld [vmem:[%s1071_s3 + $0xe0] ss:$8 sps:$4 sm:$0xff]   ;;  %v796_v58 = vld [vmem:[%s1071_s3 + $0xf4] ss:$8 sps:$4 sm:$0xff]   ;;  %v798_v59 = vld [vmem:[%s1071_s3 + $0xf0] ss:$8 sps:$4 sm:$0xff]  }
  0x12   :  { %v799_v60 = vld [vmem:[%s1072_s5 + $0x40] sm:$0xff]   ;;  %v801_v62 = vld [vmem:[%s1072_s5 + $0x48] sm:$0xff]   ;;  %v803_v0 = vld [vmem:[%s1072_s5 + $0x50] sm:$0xff]   ;;  %v51_v9 = vshrl.u32 %v50_v8, 7 }
  0x13   :  { %168 = vmatpush1.bf16.msra.mxu0 %v739_v14  ;;  %v800_v61 = vld [vmem:[%s1072_s5] sm:$0xff]   ;;  %v802_v63 = vld [vmem:[%s1072_s5 + $0x8] sm:$0xff]   ;;  %v804_v1 = vld [vmem:[%s1072_s5 + $0x10] sm:$0xff]  }
  0x14   :  { %169 = vmatprep.subr.bf16.mxu0 %v740_v16  ;;  %415 = vmatpush1.bf16.msra.mxu1 %v762_v26  ;;  %v805_v2 = vld [vmem:[%s1072_s5 + $0x58] sm:$0xff]   ;;  %v807_v4 = vld [vmem:[%s1072_s5 + $0x60] sm:$0xff]   ;;  %v809_v6 = vld [vmem:[%s1072_s5 + $0x68] sm:$0xff]   ;;  %v52_v10 = vsub.s32 0, %v51_v9  ;;  %v56_v12 = vsub.s32 1, %v51_v9 }
  0x15   :  { %416 = vmatprep.subr.bf16.mxu1 %v763_v29  ;;  %v806_v3 = vld [vmem:[%s1072_s5 + $0x18] sm:$0xff]   ;;  %v808_v5 = vld [vmem:[%s1072_s5 + $0x20] sm:$0xff]   ;;  %v810_v7 = vld [vmem:[%s1072_s5 + $0x28] sm:$0xff]  }
  0x16   :  { %v48_v11 = vld [vmem:[%s1073_s2] sm:$0x3]  ;;  %v812_v26 = vld [vmem:[%s1072_s5 + $0x30] sm:$0xff]   ;;  %v814_v28 = vld [vmem:[%s1072_s5 + $0x38] sm:$0xff]  }
  0x17   :  { %170 = vmatpush1.bf16.msra.mxu0 %v742_v18  ;;  %v53_v13 = vrot.slane %v48_v11, %v52_v10  ;;  %v57_v14 = vrot.slane %v48_v11, %v56_v12  ;;  %v236_v29 = vld [vmem:[%s1074_s4] sm:$0x3] }
  0x18   :  { %171 = vmatprep.subr.bf16.mxu0 %v743_v20  ;;  %417 = vmatpush1.bf16.msra.mxu1 %v765_v33  ;;  %v241_v30 = vrot.slane %v236_v29, %v52_v10 }
  0x19   :  { %418 = vmatprep.subr.bf16.mxu1 %v766_v35 }
  0x1b   :  { %172 = vmatpush1.bf16.msra.mxu0 %v745_v25  ;;  %v811_v25 = vld [vmem:[%s1072_s5 + $0x70] sm:$0xff]  }
  0x1c   :  { %173 = vmatprep.subr.bf16.mxu0 %v746_v27  ;;  %419 = vmatpush1.bf16.msra.mxu1 %v768_v37  ;;  %v813_v27 = vld [vmem:[%s1072_s5 + $0x78] sm:$0xff]  }
  0x1d   :  { %420 = vmatprep.subr.bf16.mxu1 %v769_v39 }
  0x1f   :  { %174 = vmatpush1.bf16.msra.mxu0 %v748_v31  ;;  %v245_v31 = vrot.slane %v236_v29, %v56_v12 }
  0x20   :  { %175 = vmatprep.subr.bf16.mxu0 %v157_v34  ;;  %421 = vmatpush1.bf16.msra.mxu1 %v771_v41 }
  0x21   :  { %422 = vmatprep.subr.bf16.mxu1 %v772_v42 }
  0x23   :  { %176 = vmatpush1.bf16.msra.mxu0 %v154_v38 }
  0x24   :  { %423 = vmatpush1.bf16.msra.mxu1 %v774_v43  ;;  %702 = vmatprep.subr.bf16.mxu0 %v799_v60  ;;  %v685_v43 = vld [vmem:[%s1075_s6] ss:$0 sm:$0xff] }
  0x25   :  { %424 = vmatprep.subr.bf16.mxu1 %v775_v44 }
  0x26   :  { %192 = vmatmul.mubr.bf16.vlgmr.msra.gmra.mrb[0].mxu0 %v29_v40 }
  0x27   :  { %703 = vmatpush3.bf16.msra.mxu0 %v800_v61 }
  0x28   :  { %425 = vmatpush1.bf16.msra.mxu1 %v777_v45  ;;  %704 = vmatprep.subr.bf16.mxu0 %v801_v62 }
  0x29   :  { %426 = vmatprep.subr.bf16.mxu1 %v778_v46 }
  0x2b   :  { %705 = vmatpush3.bf16.msra.mxu0 %v802_v63 }
  0x2c   :  { %427 = vmatpush1.bf16.msra.mxu1 %v780_v47  ;;  %706 = vmatprep.subr.bf16.mxu0 %v803_v0 }
  0x2d   :  { %428 = vmatprep.subr.bf16.mxu1 %v781_v48 }
  0x2f   :  { %707 = vmatpush3.bf16.msra.mxu0 %v804_v1 }
  0x30   :  { %429 = vmatpush1.bf16.msra.mxu1 %v783_v49  ;;  %708 = vmatprep.subr.bf16.mxu0 %v805_v2 }
  0x31   :  { %430 = vmatprep.subr.bf16.mxu1 %v784_v50 }
  0x33   :  { %709 = vmatpush3.bf16.msra.mxu0 %v806_v3 }
  0x34   :  { %431 = vmatpush1.bf16.msra.mxu1 %v786_v51  ;;  %710 = vmatprep.subr.bf16.mxu0 %v807_v4 }
  0x35   :  { %432 = vmatprep.subr.bf16.mxu1 %v787_v52 }
  0x37   :  { %711 = vmatpush3.bf16.msra.mxu0 %v808_v5 }
  0x38   :  { %433 = vmatpush1.bf16.msra.mxu1 %v789_v53  ;;  %712 = vmatprep.subr.bf16.mxu0 %v809_v6 }
  0x39   :  { %434 = vmatprep.subr.bf16.mxu1 %v790_v54 }
  0x3b   :  { %713 = vmatpush3.bf16.msra.mxu0 %v810_v7 }
  0x3c   :  { %435 = vmatpush1.bf16.msra.mxu1 %v792_v55  ;;  %714 = vmatprep.subr.bf16.mxu0 %v811_v25 }
  0x3d   :  { %436 = vmatprep.subr.bf16.mxu1 %v793_v56 }
  0x3f   :  { %715 = vmatpush3.bf16.msra.mxu0 %v812_v26 }
  0x40   :  { %437 = vmatpush1.bf16.msra.mxu1 %v795_v57  ;;  %716 = vmatprep.subr.bf16.mxu0 %v813_v27 }
  0x41   :  { %438 = vmatprep.subr.bf16.mxu1 %v796_v58 }
  0x43   :  { %717 = vmatpush3.bf16.msra.mxu0 %v814_v28 }
  0x44   :  { %439 = vmatpush1.bf16.msra.mxu1 %v798_v59 }
  0xf9   :  { %v193_v15 = vpop.f32.mrb[0].mxu0 }
  0xfa   :  { %v194_v16 = vadd.f32 %v193_v15, %v53_v13  ;;  %v195_v17 = vpop.f32.mrb[1].mxu0 }
  0xfb   :  { %v196_v18 = vadd.f32 %v195_v17, %v57_v14  ;;  %v197_v19 = vpop.f32.mrb[2].mxu0 }
  0xfc   :  { %v200_v20 = vmax.f32 %v194_v16, 0.0  ;;  %v198_v21 = vpop.f32.mrb[3].mxu0 }
  0xfd   :  { %v201_v22 = vmax.f32 %v196_v18, 0.0 }
  0xfe   :  { %v202_v24 = vpack.c.bf16 %v200_v20, %v200_v20 }
  0xff   :  { %v203_v23 = vpack.c.bf16 %v201_v22, %v201_v22 }
 0x101   :  { %440 = vmatprep.mubr.bf16.mxu1 %v203_v23 }
 0x102   :  { %441 = vmatmul.mubr.bf16.vlgmr.msra.gmra.mrb[0].mxu1 %v202_v24 }
 0x1d5   :  { %v442_v32 = vpop.f32.mrb[0].mxu1 }
 0x1d6   :  { %v443_v33 = vadd.f32 %v442_v32, %v241_v30  ;;  %v444_v34 = vpop.f32.mrb[1].mxu1 }
 0x1d7   :  { %v445_v35 = vadd.f32 %v444_v34, %v245_v31  ;;  %v446_v36 = vpop.f32.mrb[2].mxu1 }
 0x1d8   :  { %v449_v37 = vmax.f32 %v443_v33, 0.0  ;;  %v447_v38 = vpop.f32.mrb[3].mxu1 }
 0x1d9   :  { %v450_v39 = vmax.f32 %v445_v35, 0.0 }
 0x1da   :  { %v451_v41 = vpack.c.bf16 %v449_v37, %v449_v37 }
 0x1db   :  { %v452_v40 = vpack.c.bf16 %v450_v39, %v450_v39 }
 0x1dd   :  { %620 = vmatprep.mubr.bf16.mxu0 %v452_v40 }
 0x1de   :  { %621 = vmatmul.mubr.bf16.vlgmr.msra.gmra.mrb[4].mxu0 %v451_v41 }
 0x2b1   :  { %v718_v42 = vpop.f32.mrb[4].mxu0 }
 0x2b2   :  { %v719_v44 = vpop.f32.mrb[5].mxu0 }
 0x2b3   :  { %v720_v45 = vadd.f32 %v719_v44, %v718_v42  ;;  %v721_v46 = vpop.f32.mrb[6].mxu0 }
 0x2b4   :  { %v722_v47 = vpop.f32.mrb[7].mxu0 }
 0x2b5   :  { %v623_v48 = vadd.f32 %v720_v45, %v685_v43 }
 0x2b7   :  { %629 = vst.msk [vmem:[%s1076_s7] sm:$0xff] %vm628_vm3, %v623_v48 }

</bundles_post_ra>
